<compile_context>
chip_gen: v6e
topology: v6e:2x2x1
jax: 0.10.0
libtpu: 0.0.40
codegen_flags: <defaults>
</compile_context>

<pallas_src>
import jax
import jax.numpy as jnp
import numpy as np
from jax.experimental import pallas as pl
from jax.experimental.pallas import tpu as pltpu


def submodel_kernel(p_ref, x_ref, lnw_ref, lnb_ref, o_ref):
    # p_ref (SMEM, f32[5]): [A0, B0, w1, b1, ln_eps]
    #   A0, B0 = conv0 + BatchNorm(eval) folded into a single per-pixel affine.
    a0 = p_ref[0]
    c0 = p_ref[1]
    w1 = p_ref[2]
    b1 = p_ref[3]
    ln_eps = p_ref[4]

    x = x_ref[...]                                    # (B_TILE, HW) lane-dense
    # conv(1,1,1)+BN folded affine ; quant identity ; relu ; conv1 ; dequant id.
    y = jnp.maximum(x * a0 + c0, 0.0) * w1 + b1

    # LayerNorm over each sample's full (1,H,W) plane == one lane-dense row.
    # Two-pass biased mean/variance (PyTorch numerics). `y` dies once `yc` is
    # formed, so at most ~2 block-sized temporaries are live; the wrapper's
    # VMEM budget reserves 3 block-equivalents to be safe.
    m = jnp.mean(y, axis=-1, keepdims=True)           # (B_TILE, 1)
    yc = y - m
    var = jnp.mean(yc * yc, axis=-1, keepdims=True)
    inv = jax.lax.rsqrt(var + ln_eps)
    # ln weight/bias are (1, HW) and broadcast across the sample tile.
    o_ref[...] = yc * inv * lnw_ref[...] + lnb_ref[...]


def _fold_params(params):
    """conv0 + BatchNorm(eval) -> per-pixel affine (a0, c0); conv1 stays (w1, b1)."""
    w0, b0 = params[0], params[1]
    bn_g, bn_b = params[2], params[3]
    bn_mean, bn_var, bn_eps = params[4], params[5], params[6]
    w1, b1, ln_eps = params[7], params[8], params[9]
    scale = bn_g / jnp.sqrt(bn_var + bn_eps)          # 1/sqrt: matches BN formula
    a0 = w0 * scale
    c0 = (b0 - bn_mean) * scale + bn_b
    return a0, c0, w1, b1, ln_eps


def _vmem_capacity_bytes(default=64 << 20):
    """Best-effort physical VMEM query; conservative default (v7x-sized)."""
    try:
        info_fn = getattr(pltpu, "get_tpu_info", None)
        if info_fn is not None:
            return int(info_fn().vmem_capacity_bytes)
    except Exception:
        pass
    return default


def _pick_b_tile(n, hw, block_cap_bytes):
    """Rows (samples) per grid step.

    - n <= 8: one step with the full batch (block sublane dim == full array dim
      is legal; splitting below 8 sublanes is not).
    - n >  8: start at 8 (sublane-aligned) and grow x2 while the block stays
      under the VMEM cap, the padded grid keeps >= 2 steps (v7x: 2 TensorCores)
      and padding waste stays under ~12.5% of the batch.
    """
    if n <= 8:
        return n
    bt = 8
    while True:
        cand = bt * 2
        n_pad = -(-n // cand) * cand
        if cand * hw * 4 > block_cap_bytes:
            break
        if n_pad // cand < 2:
            break
        if (n_pad - n) > n // 8:
            break
        bt = cand
    return bt


def submodel_forward(x, params, ln_w, ln_b):
    """x: (N,1,H,W) f32; params: f32[10] raw module params
       [w0, b0, bn_gamma, bn_beta, bn_mean, bn_var, bn_eps, w1, b1, ln_eps];
       ln_w / ln_b: (1,H,W) f32."""
    N, C, H, W = x.shape
    assert C == 1
    HW = H * W
    assert HW % 128 == 0, "per-sample plane is flattened onto the lane axis"

    a0, c0, w1, b1, ln_eps = _fold_params(params)
    folded = jnp.stack([a0, c0, w1, b1, ln_eps]).astype(jnp.float32)

    # Lane-dense layout: flatten each (1,H,W) plane onto the lane axis.
    x2 = x.reshape(N, HW)
    lw2 = ln_w.reshape(1, HW)
    lb2 = ln_b.reshape(1, HW)

    # Generation-aware block cap: 2 MiB blocks already hit ~85% of HBM roofline
    # and are safe on v7x's 64 MiB VMEM; allow 4 MiB on 128 MiB parts (v5e/v6e).
    vmem_cap = _vmem_capacity_bytes()
    block_cap = (4 << 20) if vmem_cap >= (100 << 20) else (2 << 20)

    bt = _pick_b_tile(N, HW, block_cap)
    n_pad = -(-N // bt) * bt
    if n_pad != N:
        # Pad rows are zeros; they produce finite LN output and are dropped.
        x2 = jnp.pad(x2, ((0, n_pad - N), (0, 0)))
    grid = (n_pad // bt,)

    # Explicit VMEM budget: double-buffered x + out blocks, ~3 block-sized LN
    # temporaries, double-buffered sublane-padded (8, HW) LN param tiles, margin.
    blk_bytes = bt * HW * 4
    lnp_bytes = 8 * HW * 4
    budget = 4 * blk_bytes + 3 * blk_bytes + 4 * lnp_bytes + (2 << 20)
    vmem_limit = int(min(max(budget, 32 << 20), 48 << 20))

    cost = pl.CostEstimate(
        flops=int(10 * n_pad * HW),              # folded affine + relu + LN
        transcendentals=int(n_pad),              # one rsqrt per sample
        bytes_accessed=int((2 * n_pad * HW + 2 * HW) * 4),
    )

    out2 = pl.pallas_call(
        submodel_kernel,
        out_shape=jax.ShapeDtypeStruct((n_pad, HW), jnp.float32),
        grid_spec=pltpu.PrefetchScalarGridSpec(
            num_scalar_prefetch=0,
            grid=grid,
            in_specs=[
                pl.BlockSpec(memory_space=pltpu.SMEM),        # folded scalars
                pl.BlockSpec((bt, HW), lambda n: (n, 0)),     # x  (lane-dense)
                pl.BlockSpec((1, HW), lambda n: (0, 0)),      # ln weight (grid-invariant)
                pl.BlockSpec((1, HW), lambda n: (0, 0)),      # ln bias   (grid-invariant)
            ],
            out_specs=pl.BlockSpec((bt, HW), lambda n: (n, 0)),
        ),
        compiler_params=pltpu.CompilerParams(
            dimension_semantics=("parallel",),
            vmem_limit_bytes=vmem_limit,
        ),
        cost_estimate=cost,
    )(folded, x2, lw2, lb2)

    return out2[:N].reshape(N, 1, H, W)


def reference_forward(x, params, ln_w, ln_b):
    """Pure-JAX reference with PyTorch op ordering (eval BN, biased LN variance)."""
    w0, b0, bn_g, bn_b, bn_mean, bn_var, bn_eps, w1, b1, ln_eps = [
        params[i] for i in range(10)]
    y = x * w0 + b0                                              # conv(1,1,1)
    y = (y - bn_mean) / jnp.sqrt(bn_var + bn_eps) * bn_g + bn_b  # BatchNorm2d (eval)
    y = jnp.maximum(y, 0.0)                                      # quant(id) + relu
    y = y * w1 + b1                                              # conv1(1,1,1)
    m = jnp.mean(y, axis=(1, 2, 3), keepdims=True)               # LayerNorm([1,H,W])
    v = jnp.mean((y - m) ** 2, axis=(1, 2, 3), keepdims=True)
    return (y - m) / jnp.sqrt(v + ln_eps) * ln_w[None] + ln_b[None]


def _run_case(key, N, H, W, identity_ln, tol):
    kx, klw, klb = jax.random.split(key, 3)
    x = jax.random.normal(kx, (N, 1, H, W), dtype=jnp.float32)

    # Fixed, well-conditioned parameters: after the folded affine + relu +
    # conv1, |mean(y)| << std(y), so f32 reduction-order differences between
    # the kernel and the XLA reference are NOT amplified by the LayerNorm.
    params = jnp.array(
        [0.8, 0.25,            # conv0 weight, bias
         1.2, -0.1,            # bn gamma, beta
         0.15, 0.9, 1e-5,      # bn running mean, running var, eps
         0.9, -0.35,           # conv1 weight, bias
         1e-5],                # layernorm eps
        dtype=jnp.float32)

    if identity_ln:
        ln_w = jnp.ones((1, H, W), dtype=jnp.float32)
        ln_b = jnp.zeros((1, H, W), dtype=jnp.float32)
    else:
        ln_w = 1.0 + 0.1 * jax.random.normal(klw, (1, H, W), dtype=jnp.float32)
        ln_b = 0.1 * jax.random.normal(klb, (1, H, W), dtype=jnp.float32)

    out = jax.block_until_ready(submodel_forward(x, params, ln_w, ln_b))
    ref = reference_forward(x, params, ln_w, ln_b)
    np.testing.assert_allclose(np.asarray(out), np.asarray(ref),
                               rtol=tol, atol=tol)


if __name__ == "__main__":
    key = jax.random.PRNGKey(0)
    k1, k2, k3, k4 = jax.random.split(key, 4)
    # Tolerances are sized for f32 LayerNorm statistics: the drift scales with
    # the per-sample reduction length (HW), not with any semantic difference.
    _run_case(k1, N=2,  H=32,  W=32,  identity_ln=True,  tol=1e-4)  # 1 grid step
    _run_case(k2, N=16, H=32,  W=32,  identity_ln=False, tol=1e-4)  # 2 steps, bt=8
    _run_case(k3, N=12, H=16,  W=16,  identity_ln=False, tol=1e-4)  # pad 12 -> 16
    _run_case(k4, N=2,  H=224, W=224, identity_ln=False, tol=3e-4)  # module's real LN size
    print("KERNEL_OK")
</pallas_src>

<mosaic_0001>
module attributes {stable_mosaic.version = 11 : i64} {
  func.func @submodel_kernel(%arg0: i32, %arg1: memref<5xf32, #tpu.memory_space<smem>>, %arg2: memref<2x1024xf32, #tpu.memory_space<vmem>>, %arg3: memref<1x1024xf32, #tpu.memory_space<vmem>>, %arg4: memref<1x1024xf32, #tpu.memory_space<vmem>>, %arg5: memref<2x1024xf32, #tpu.memory_space<vmem>>) attributes {dimension_semantics = [#tpu.dimension_semantics<parallel>], iteration_bounds = array<i64: 1>, scalar_prefetch = 0 : i64, scratch_operands = 0 : i64, tpu.core_type = #tpu.core_type<tc>, window_params = [{transform_indices = @transform_0, window_bounds = array<i64: 5>}, {transform_indices = @transform_1, window_bounds = array<i64: 2, 1024>}, {pipeline_mode = #tpu.pipeline_mode<synchronous>, transform_indices = @transform_2, window_bounds = array<i64: 1, 1024>}, {pipeline_mode = #tpu.pipeline_mode<synchronous>, transform_indices = @transform_3, window_bounds = array<i64: 1, 1024>}, {transform_indices = @transform_4, window_bounds = array<i64: 2, 1024>}]} {
    %c0 = arith.constant 0 : index
    %0 = memref.load %arg1[%c0] : memref<5xf32, #tpu.memory_space<smem>>
    %c1 = arith.constant 1 : index
    %1 = memref.load %arg1[%c1] : memref<5xf32, #tpu.memory_space<smem>>
    %c2 = arith.constant 2 : index
    %2 = memref.load %arg1[%c2] : memref<5xf32, #tpu.memory_space<smem>>
    %c3 = arith.constant 3 : index
    %3 = memref.load %arg1[%c3] : memref<5xf32, #tpu.memory_space<smem>>
    %c4 = arith.constant 4 : index
    %4 = memref.load %arg1[%c4] : memref<5xf32, #tpu.memory_space<smem>>
    %c0_0 = arith.constant 0 : index
    %c0_1 = arith.constant 0 : index
    %5 = vector.load %arg2[%c0_0, %c0_1] : memref<2x1024xf32, #tpu.memory_space<vmem>>, vector<2x1024xf32>
    %6 = vector.broadcast %0 : f32 to vector<2x1024xf32>
    %7 = arith.mulf %5, %6 : vector<2x1024xf32>
    %8 = vector.broadcast %1 : f32 to vector<2x1024xf32>
    %9 = arith.addf %7, %8 : vector<2x1024xf32>
    %cst = arith.constant 0.000000e+00 : f32
    %10 = vector.broadcast %cst : f32 to vector<2x1024xf32>
    %11 = arith.maximumf %9, %10 : vector<2x1024xf32>
    %12 = vector.broadcast %2 : f32 to vector<2x1024xf32>
    %13 = arith.mulf %11, %12 : vector<2x1024xf32>
    %14 = vector.broadcast %3 : f32 to vector<2x1024xf32>
    %15 = arith.addf %13, %14 : vector<2x1024xf32>
    %cst_2 = arith.constant dense<0.000000e+00> : vector<2xf32>
    %16 = vector.multi_reduction <add>, %15, %cst_2 [1] : vector<2x1024xf32> to vector<2xf32>
    %17 = vector.shape_cast %16 : vector<2xf32> to vector<2x1xf32>
    %cst_3 = arith.constant 1.024000e+03 : f32
    %18 = vector.broadcast %cst_3 : f32 to vector<2x1xf32>
    %19 = arith.divf %17, %18 : vector<2x1xf32>
    %20 = vector.broadcast %19 : vector<2x1xf32> to vector<2x1024xf32>
    %21 = arith.subf %15, %20 : vector<2x1024xf32>
    %22 = arith.mulf %21, %21 : vector<2x1024xf32>
    %cst_4 = arith.constant dense<0.000000e+00> : vector<2xf32>
    %23 = vector.multi_reduction <add>, %22, %cst_4 [1] : vector<2x1024xf32> to vector<2xf32>
    %24 = vector.shape_cast %23 : vector<2xf32> to vector<2x1xf32>
    %cst_5 = arith.constant 1.024000e+03 : f32
    %25 = vector.broadcast %cst_5 : f32 to vector<2x1xf32>
    %26 = arith.divf %24, %25 : vector<2x1xf32>
    %27 = vector.broadcast %4 : f32 to vector<2x1xf32>
    %28 = arith.addf %26, %27 : vector<2x1xf32>
    %29 = math.rsqrt %28 : vector<2x1xf32>
    %30 = vector.broadcast %29 : vector<2x1xf32> to vector<2x1024xf32>
    %31 = arith.mulf %21, %30 : vector<2x1024xf32>
    %c0_6 = arith.constant 0 : index
    %c0_7 = arith.constant 0 : index
    %32 = vector.load %arg3[%c0_6, %c0_7] : memref<1x1024xf32, #tpu.memory_space<vmem>>, vector<1x1024xf32>
    %33 = vector.broadcast %32 : vector<1x1024xf32> to vector<2x1024xf32>
    %34 = arith.mulf %31, %33 : vector<2x1024xf32>
    %c0_8 = arith.constant 0 : index
    %c0_9 = arith.constant 0 : index
    %35 = vector.load %arg4[%c0_8, %c0_9] : memref<1x1024xf32, #tpu.memory_space<vmem>>, vector<1x1024xf32>
    %36 = vector.broadcast %35 : vector<1x1024xf32> to vector<2x1024xf32>
    %37 = arith.addf %34, %36 : vector<2x1024xf32>
    %c0_10 = arith.constant 0 : index
    %c0_11 = arith.constant 0 : index
    %38 = vector.load %arg5[%c0_10, %c0_11] : memref<2x1024xf32, #tpu.memory_space<vmem>>, vector<2x1024xf32>
    tpu.vector_store %arg5[%c0_10, %c0_11], %37 {strides = array<i32>} : memref<2x1024xf32, #tpu.memory_space<vmem>>, vector<2x1024xf32>,
    return
  }
  func.func @transform_0(%arg0: i32) -> i32 {
    %c0_i32 = arith.constant 0 : i32
    %c0_i32_0 = arith.constant 0 : i32
    return %c0_i32 : i32
  }
  func.func @transform_1(%arg0: i32) -> (i32, i32) {
    %c0_i32 = arith.constant 0 : i32
    %c0_i32_0 = arith.constant 0 : i32
    return %arg0, %c0_i32 : i32, i32
  }
  func.func @transform_2(%arg0: i32) -> (i32, i32) {
    %c0_i32 = arith.constant 0 : i32
    %c0_i32_0 = arith.constant 0 : i32
    %c0_i32_1 = arith.constant 0 : i32
    return %c0_i32, %c0_i32_0 : i32, i32
  }
  func.func @transform_3(%arg0: i32) -> (i32, i32) {
    %c0_i32 = arith.constant 0 : i32
    %c0_i32_0 = arith.constant 0 : i32
    %c0_i32_1 = arith.constant 0 : i32
    return %c0_i32, %c0_i32_0 : i32, i32
  }
  func.func @transform_4(%arg0: i32) -> (i32, i32) {
    %c0_i32 = arith.constant 0 : i32
    %c0_i32_0 = arith.constant 0 : i32
    return %arg0, %c0_i32 : i32, i32
  }
}

</mosaic_0001>

<bundles_post_ra>
// kernel: tpu_custom_call.1
= control target key start
LH: loop header
LB: loop body
LE: loop exit
PB: predicated region body
PF: predicated region fallthrough
CT: control target
= control target key end

     0   :  { %9 = vsyncpa [#allocation5], 0  ;;  %s617_s0 = inlined_call_operand.hbm [shape: f32[5], index: 0, kind: input, shape index: {}]   ;;  %s618_s1 = inlined_call_operand.hbm [shape: f32[2,1024], index: 1, kind: input, shape index: {}]   ;;  %s619_s2 = inlined_call_operand.hbm [shape: f32[1,1024], index: 2, kind: input, shape index: {}]   ;;  %s620_s3 = inlined_call_operand.hbm [shape: f32[1,1024], index: 3, kind: input, shape index: {}]   ;;  %s621_s4 = inlined_call_operand.hbm [shape: f32[2,1024], index: 4, kind: output, shape index: {}]  }
   0x1   :  { %10 = vsyncpa [#allocation3], 0 }
   0x2   :  { %11 = vsyncpa [#allocation8], 0 }
   0x3   :  { %12 = vsyncpa [#allocation4], 0  ;;  %s510_s15 = smov [#allocation7]   ;;  %s511_s17 = smov [#allocation6]  }
   0x4   :  { %s37_s16 = sshll.u32 %s510_s15, 4  ;;  %s27_s18 = sshll.u32 %s511_s17, 4  ;;  %s38_s16 = int_to_ptr.vmem [resolvable:$true] %s37_s16  ;;  %s28_s18 = int_to_ptr.vmem [resolvable:$true] %s27_s18 }
   0x5   :  { %s422_s19 = scalar_lea.vmem %s38_s16, 128  ;;  %p427_p1 = scmp.lt.s32.totalorder %s38_s16, %s38_s16 }
   0x6   :  { %p423_p0 = scmp.ne.s32.totalorder %s38_s16, %s422_s19  ;;  %p428_p2 = scmp.lt.s32.totalorder %s422_s19, %s422_s19 }
   0x8   :  { %p429_p3 = por %p428_p2, %p427_p1 }
   0xa   :  { %p430_p4 = pnand %p429_p3, %p423_p0 }
   0xc   :  { %433 = shalt.err (!%p430_p4)
}
   0xd   :  { %40 = dma.hbm_to_vmem [thread:$0]  %s619_s2, 128, %s38_s16, [#allocation8]  }
   0xe   :  { %s512_s22 = smov [#allocation2]   ;;  %s450_s25 = scalar_lea.vmem %s28_s18, 256 }
   0xf   :  { %20 = dma.hbm_to_smem %s617_s0, 16, %s512_s22, [#allocation5]  }
  0x10   :  { %p451_p5 = scmp.ne.s32.totalorder %s28_s18, %s450_s25  ;;  %p455_p6 = scmp.lt.s32.totalorder %s28_s18, %s28_s18 }
  0x11   :  { %p456_p7 = scmp.lt.s32.totalorder %s450_s25, %s450_s25 }
  0x13   :  { %p457_p8 = por %p456_p7, %p455_p6 }
  0x15   :  { %p458_p9 = pnand %p457_p8, %p451_p5 }
  0x17   :  { %461 = shalt.err (!%p458_p9)
}
  0x18   :  { %30 = dma.hbm_to_vmem [thread:$0]  %s618_s1, 256, %s28_s18, [#allocation3]  }
  0x19   :  { %s513_s28 = smov [#allocation9]  }
  0x1a   :  { %s47_s29 = sshll.u32 %s513_s28, 4  ;;  %s48_s29 = int_to_ptr.vmem [resolvable:$true] %s47_s29 }
  0x1b   :  { %s470_s2 = scalar_lea.vmem %s48_s29, 128  ;;  %p475_p11 = scmp.lt.s32.totalorder %s48_s29, %s48_s29 }
  0x1c   :  { %p471_p10 = scmp.ne.s32.totalorder %s48_s29, %s470_s2  ;;  %p476_p12 = scmp.lt.s32.totalorder %s470_s2, %s470_s2 }
  0x1e   :  { %p477_p13 = por %p476_p12, %p475_p11 }
  0x20   :  { %p478_p0 = pnand %p477_p13, %p471_p10 }
  0x22   :  { %481 = shalt.err (!%p478_p0)
}
  0x23   :  { %50 = dma.hbm_to_vmem [thread:$0]  %s620_s3, 128, %s48_s29, [#allocation8]  }
  0x24   :  { %502 = dma.done.wait [#allocation5], 16  }
  0x25   :  { %503 = vsyncadd [#allocation5], 4294967280 }
  0x26   :  { %504 = dma.done.wait [#allocation3], 256  }
  0x27   :  { %505 = vsyncadd [#allocation3], 4294967040 }
  0x28   :  { %506 = dma.done.wait [#allocation8], 256  }
  0x29   :  { %507 = vsyncadd [#allocation8], 4294967040 }
  0x2a   :  { %63 = sfence }
  0x2b   :  { %s64_s1 = sld [smem:[#allocation2]]  ;;  %v69_v0 = vld [vmem:[#allocation6] sm:$0xff]  ;;  %v70_v1 = vld [vmem:[#allocation6 + $0x8] sm:$0xff]  ;;  %v514_v2 = vmov 1983009808   ;;  %v91_v4 = vlaneseq  ;;  %vm129_vm0 = vcmask 1041408  }
  0x2c   :  { %s401_s5 = sld [smem:[#allocation2 + $0x1]]  ;;  %v89_v3 = vunpack.c.l.s4 %v514_v2  ;;  %v515_v47 = vmov 269488144   ;;  %s516_s8 = smov [#allocation10]  }
  0x2d   :  { %s402_s6 = sld [smem:[#allocation2 + $0x2]]  ;;  %v554_v12 = vshrl.u32 %v91_v4, 7  ;;  %v151_v48 = vunpack.c.l.s4 %v515_v47  ;;  %s390_s9 = sshll.u32 %s516_s8, 4  ;;  %s391_s9 = int_to_ptr.vmem [resolvable:$true] %s390_s9 }
  0x2e   :  { %s403_s7 = sld [smem:[#allocation2 + $0x3]]  ;;  %v90_v11 = vunpack.c.0.s8 %v89_v3  ;;  %s482_s10 = scalar_lea.vmem %s391_s9, 256 }
  0x2f   :  { %v152_v49 = vunpack.c.0.s8 %v151_v48  ;;  %s404_s3 = sld [smem:[#allocation2 + $0x4]]  ;;  %p483_p1 = scmp.ne.s32.totalorder %s391_s9, %s482_s10 }
  0x30   :  { %v557_v19 = vsub.s32 %v90_v11, %v554_v12  ;;  %p487_p2 = scmp.lt.s32.totalorder %s391_s9, %s391_s9  ;;  %p488_p3 = scmp.lt.s32.totalorder %s482_s10, %s482_s10 }
  0x31   :  { %v71_v5 = vstv %s64_s1  ;;  %v572_v50 = vsub.s32 %v152_v49, %v554_v12 }
  0x32   :  { %v72_v6 = vmul.f32 %v71_v5, %v69_v0  ;;  %v73_v7 = vmul.f32 %v71_v5, %v70_v1  ;;  %v74_v8 = vstv %s401_s5  ;;  %p489_p4 = por %p488_p3, %p487_p2 }
  0x33   :  { %v79_v13 = vstv %s402_s6 }
  0x34   :  { %v75_v9 = vadd.f32 %v74_v8, %v72_v6  ;;  %v76_v10 = vadd.f32 %v74_v8, %v73_v7  ;;  %v82_v16 = vstv %s403_s7  ;;  %p490_p5 = pnand %p489_p4, %p483_p1 }
  0x36   :  { %v77_v14 = vmax.f32 %v75_v9, 0.0  ;;  %v78_v15 = vmax.f32 %v76_v10, 0.0 }
  0x38   :  { %v80_v17 = vmul.f32 %v79_v13, %v77_v14  ;;  %v81_v18 = vmul.f32 %v79_v13, %v78_v15 }
  0x3a   :  { %v83_v20 = vadd.f32 %v82_v16, %v80_v17  ;;  %v84_v21 = vadd.f32 %v82_v16, %v81_v18 }
  0x3c   :  { %v87_v22 = vcombine.high %v83_v20, %v83_v20  ;;  %v94_v23 = vrot.slane %v83_v20, %v557_v19  ;;  %v104_v26 = vcombine.high %v84_v21, %v84_v21  ;;  %v111_v27 = vrot.slane %v84_v21, %v557_v19 }
  0x3e   :  { %v101_v24 = vrot.slane %v87_v22, %v557_v19  ;;  %v102_v25 = vcombine.high %v94_v23, %v94_v23  ;;  %v130_v28 = vsel %vm129_vm0, %v94_v23, 0.0  ;;  %v118_v33 = vrot.slane %v104_v26, %v557_v19 }
  0x3f   :  { %v119_v34 = vcombine.high %v111_v27, %v111_v27  ;;  %v137_v37 = vsel %vm129_vm0, %v111_v27, 0.0  ;;  %v250_v26 = vsub.s32 2, %v554_v12  ;;  %v254_v27 = vsub.s32 3, %v554_v12 }
  0x40   :  { %v103_v29 = vcombine.high %v101_v24, %v101_v24  ;;  %v131_v30 = vsel %vm129_vm0, %v102_v25, 0.0  ;;  %v133_v31 = vsel %vm129_vm0, %v101_v24, 0.0  ;;  %v120_v39 = vcombine.high %v118_v33, %v118_v33 }
  0x41   :  { %v132_v32 = vadd.f32 %v131_v30, %v130_v28  ;;  %v139_v40 = vsel %vm129_vm0, %v119_v34, 0.0  ;;  %v141_v42 = vsel %vm129_vm0, %v118_v33, 0.0  ;;  %v242_v24 = vsub.s32 0, %v554_v12  ;;  %v238_v30 = vld [vmem:[#allocation7] sm:$0xff]  ;;  %v310_v34 = vld [vmem:[#allocation9] sm:$0xff] }
  0x42   :  { %v135_v35 = vsel %vm129_vm0, %v103_v29, 0.0  ;;  %v143_v44 = vsel %vm129_vm0, %v120_v39, 0.0  ;;  %v246_v25 = vsub.s32 1, %v554_v12  ;;  %v258_v28 = vsub.s32 4, %v554_v12 }
  0x43   :  { %v134_v36 = vadd.f32 %v133_v31, %v132_v32  ;;  %v262_v31 = vsub.s32 5, %v554_v12  ;;  %v266_v32 = vsub.s32 6, %v554_v12  ;;  %v270_v33 = vsub.s32 7, %v554_v12 }
  0x44   :  { %v259_v39 = vrot.slane %v238_v30, %v258_v28  ;;  %v331_v47 = vrot.slane %v310_v34, %v258_v28 }
  0x45   :  { %v136_v38 = vadd.f32 %v135_v35, %v134_v36  ;;  %v243_v35 = vrot.slane %v238_v30, %v242_v24  ;;  %v247_v36 = vrot.slane %v238_v30, %v246_v25  ;;  %v335_v48 = vrot.slane %v310_v34, %v262_v31 }
  0x46   :  { %v339_v49 = vrot.slane %v310_v34, %v266_v32 }
  0x47   :  { %v138_v41 = vadd.f32 %v137_v37, %v136_v38  ;;  %v251_v37 = vrot.slane %v238_v30, %v250_v26  ;;  %v255_v38 = vrot.slane %v238_v30, %v254_v27 }
  0x49   :  { %v140_v43 = vadd.f32 %v139_v40, %v138_v41  ;;  %v263_v40 = vrot.slane %v238_v30, %v262_v31  ;;  %v267_v41 = vrot.slane %v238_v30, %v266_v32  ;;  %v273_v12 = vcombine.low %v251_v37, %v255_v38 }
  0x4b   :  { %v142_v45 = vadd.f32 %v141_v42, %v140_v43  ;;  %v271_v42 = vrot.slane %v238_v30, %v270_v33  ;;  %v315_v43 = vrot.slane %v310_v34, %v242_v24 }
  0x4d   :  { %v144_v46 = vadd.f32 %v143_v44, %v142_v45  ;;  %v319_v44 = vrot.slane %v310_v34, %v246_v25  ;;  %v323_v45 = vrot.slane %v310_v34, %v250_v26 }
  0x4f   :  { %145 = vadd.xlane.f32.xlu0 %v144_v46  ;;  %v327_v46 = vrot.slane %v310_v34, %v254_v27 }
  0xd8   :  { %v146_v51 = vpop.xlane.xlu0 %145 }
  0xd9   :  { %v148_v52 = vmul.f32 0.0009765625, %v146_v51  ;;  %v343_v51 = vrot.slane %v310_v34, %v270_v33 }
  0xdb   :  { %v156_v53 = vrot.slane %v148_v52, %v572_v50  ;;  %v272_v52 = vcombine.low %v243_v35, %v247_v36 }
  0xdd   :  { %v575_v54 = vsub.f32 %v83_v20, %v156_v53  ;;  %v577_v55 = vsub.f32 %v84_v21, %v156_v53  ;;  %v224_v21 = vstv %s404_s3  ;;  %v289_v53 = vcombine.low %v259_v39, %v263_v40 }
  0xdf   :  { %v160_v56 = vmul.f32 %v575_v54, %v575_v54  ;;  %v161_v57 = vmul.f32 %v577_v55, %v577_v55 }
  0xe1   :  { %v164_v58 = vcombine.high %v160_v56, %v160_v56  ;;  %v171_v59 = vrot.slane %v160_v56, %v557_v19  ;;  %v188_v62 = vrot.slane %v161_v57, %v557_v19  ;;  %v181_v2 = vcombine.high %v161_v57, %v161_v57 }
  0xe2   :  { %v290_v56 = vcombine.low %v267_v41, %v271_v42  ;;  %v344_v57 = vcombine.low %v315_v43, %v319_v44 }
  0xe3   :  { %v178_v60 = vrot.slane %v164_v58, %v557_v19  ;;  %v179_v61 = vcombine.high %v171_v59, %v171_v59  ;;  %v206_v63 = vsel %vm129_vm0, %v171_v59, 0.0  ;;  %v195_v6 = vrot.slane %v181_v2, %v557_v19 }
  0xe4   :  { %v196_v7 = vcombine.high %v188_v62, %v188_v62  ;;  %v213_v10 = vsel %vm129_vm0, %v188_v62, 0.0  ;;  %v345_v58 = vcombine.low %v323_v45, %v327_v46  ;;  %v361_v59 = vcombine.low %v331_v47, %v335_v48 }
  0xe5   :  { %v207_v0 = vsel %vm129_vm0, %v179_v61, 0.0  ;;  %v180_v1 = vcombine.high %v178_v60, %v178_v60  ;;  %v209_v4 = vsel %vm129_vm0, %v178_v60, 0.0  ;;  %v197_v13 = vcombine.high %v195_v6, %v195_v6 }
  0xe6   :  { %v208_v3 = vadd.f32 %v207_v0, %v206_v63  ;;  %v215_v14 = vsel %vm129_vm0, %v196_v7, 0.0  ;;  %v217_v16 = vsel %vm129_vm0, %v195_v6, 0.0  ;;  %v362_v60 = vcombine.low %v339_v49, %v343_v51 }
  0xe7   :  { %v211_v8 = vsel %vm129_vm0, %v180_v1, 0.0  ;;  %v219_v18 = vsel %vm129_vm0, %v197_v13, 0.0  ;;  %v280_v61 = vrot.slane %v272_v52, %v557_v19  ;;  %v287_v62 = vrot.slane %v273_v12, %v557_v19 }
  0xe8   :  { %v210_v5 = vadd.f32 %v209_v4, %v208_v3  ;;  %v297_v63 = vrot.slane %v289_v53, %v557_v19  ;;  %v304_v0 = vrot.slane %v290_v56, %v557_v19  ;;  %v352_v1 = vrot.slane %v344_v57, %v557_v19 }
  0xe9   :  { %v359_v2 = vrot.slane %v345_v58, %v557_v19  ;;  %v369_v3 = vrot.slane %v361_v59, %v557_v19  ;;  %v376_v4 = vrot.slane %v362_v60, %v557_v19  ;;  %v288_v7 = vcombine.low %v280_v61, %v287_v62 }
  0xea   :  { %v212_v9 = vadd.f32 %v211_v8, %v210_v5  ;;  %v305_v8 = vcombine.low %v297_v63, %v304_v0 }
  0xeb   :  { %v377_v13 = vcombine.low %v369_v3, %v376_v4 }
  0xec   :  { %v214_v11 = vadd.f32 %v213_v10, %v212_v9 }
  0xee   :  { %v216_v15 = vadd.f32 %v215_v14, %v214_v11  ;;  %v360_v11 = vcombine.low %v352_v1, %v359_v2 }
  0xf0   :  { %v218_v17 = vadd.f32 %v217_v16, %v216_v15 }
  0xf2   :  { %v220_v20 = vadd.f32 %v219_v18, %v218_v17 }
  0xf4   :  { %221 = vadd.xlane.f32.xlu0 %v220_v20 }
 0x17d   :  { %v222_v22 = vpop.xlane.xlu0 %221 }
 0x17e   :  { %v223_v23 = vmul.f32 0.0009765625, %v222_v22 }
 0x180   :  { %v225_v29 = vadd.f32 %v224_v21, %v223_v23 }
 0x182   :  { %412 = vrsqrt.f32 %v225_v29 }
 0x18f   :  { %v413_v5 = vpop.eup %412 }
 0x190   :  { %v234_v6 = vrot.slane %v413_v5, %v572_v50 }
 0x192   :  { %v236_v9 = vmul.f32 %v234_v6, %v575_v54  ;;  %v237_v10 = vmul.f32 %v234_v6, %v577_v55 }
 0x194   :  { %v308_v14 = vmul.f32 %v288_v7, %v236_v9  ;;  %v309_v15 = vmul.f32 %v305_v8, %v237_v10 }
 0x196   :  { %v380_v16 = vadd.f32 %v360_v11, %v308_v14  ;;  %v381_v17 = vadd.f32 %v377_v13, %v309_v15 }
 0x198   :  { %382 = vst [vmem:[#allocation10] sm:$0xff] %v380_v16  ;;  %383 = vst [vmem:[#allocation10 + $0x8] sm:$0xff] %v381_v17 }
 0x199   :  { %493 = shalt.err (!%p490_p5)
}
 0x19a   :  { %393 = dma.vmem_to_hbm [thread:$0]  %s391_s9, 256, %s621_s4, [#allocation4]  }
 0x19b   :  { %508 = dma.done.wait [#allocation4], 256  }
 0x19c   :  { %509 = vsyncadd [#allocation4], 4294967040 }
 0x19d   :  { %397 = vsyncpa [#allocation3], 1 }
 0x19e   :  { %398 = vsyncpa [#allocation8], 1 }
 0x19f   :  { %399 = vsyncpa [#allocation4], 1 }
 0x1a0   :  { %400 = vsyncpa [#allocation5], 1 }

</bundles_post_ra>
